<compile_context>
chip_gen: v7x
topology: tpu7x:2x2x1
jax: 0.10.0
libtpu: 0.0.40
codegen_flags: <defaults>
</compile_context>

<pallas_src>
import jax
import jax.numpy as jnp
import numpy as np
from jax.experimental import pallas as pl
from jax.experimental.pallas import tpu as pltpu


def _round_up(x, m):
    return ((x + m - 1) // m) * m


def _length_regulator_kernel(cum_ref, cum_prev_ref, x_ref, out_ref):
    # cum_ref / cum_prev_ref: (1, 1, Tp) int32 -- inclusive / exclusive prefix sums
    # x_ref:   (1, Tp, Dp)                     -- per-batch source frames (lane-padded)
    # out_ref: (1, TM, Dp)                     -- one MAX_LEN tile of the expanded output
    tm = out_ref.shape[1]
    tp = x_ref.shape[1]

    # absolute output-row indices covered by this MAX_LEN tile
    t0 = pl.program_id(1) * tm
    t_idx = jax.lax.broadcasted_iota(jnp.int32, (tm, tp), 0) + t0

    cum = cum_ref[0]            # (1, Tp) int32
    cum_prev = cum_prev_ref[0]  # (1, Tp) int32

    # one-hot gather matrix: G[t, i] = 1 iff cum_prev[i] <= t < cum[i]
    # (int32 compares, single cast to the matmul dtype)
    gather = jnp.logical_and(t_idx >= cum_prev, t_idx < cum).astype(x_ref.dtype)

    # hot path: expansion as an MXU matmul (TM, Tp) @ (Tp, Dp) -> (TM, Dp)
    out_ref[0] = jnp.dot(gather, x_ref[0],
                         preferred_element_type=jnp.float32).astype(out_ref.dtype)


def length_regulator(x, duration, max_len, *, tile_m=512):
    """x: (B, T, D); duration: (B, T) int; returns (out (B, max_len, D), mel_len (B,))."""
    B, T, D = x.shape

    # ---- scalar prep in plain XLA (tiny (B, T) work; keeps the kernel MXU-only) ----
    dur = jnp.maximum(duration, 0).astype(jnp.int32)
    mel_len = jnp.sum(dur, axis=-1).astype(jnp.int32)

    # lane / sublane aligned padded shapes
    Tp = _round_up(max(T, 128), 128)
    Dp = _round_up(max(D, 128), 128)
    tm_eff = min(int(tile_m), _round_up(max_len, 8))
    MLp = _round_up(max_len, tm_eff)

    # pad durations with zeros -> empty intervals for padded source positions
    dur_p = jnp.pad(dur, ((0, 0), (0, Tp - T)))
    cum = jnp.cumsum(dur_p, axis=-1).astype(jnp.int32)       # inclusive prefix sum
    cum_prev = (cum - dur_p).astype(jnp.int32)                # exclusive prefix sum
    cum = cum.reshape(B, 1, Tp)
    cum_prev = cum_prev.reshape(B, 1, Tp)

    x_p = jnp.pad(x, ((0, 0), (0, Tp - T), (0, Dp - D)))

    # explicit (conservative) scoped-VMEM budget: double-buffered out + x tiles,
    # the gather operand, and the two scalar rows.
    itemsize = jnp.dtype(x.dtype).itemsize
    vmem_est = (2 * tm_eff * Dp * itemsize
                + 2 * Tp * Dp * itemsize
                + tm_eff * Tp * itemsize
                + 4 * Tp * 8
                + (1 << 20))
    vmem_limit = int(min(max(2 * vmem_est, 8 << 20), 48 << 20))

    out_p = pl.pallas_call(
        _length_regulator_kernel,
        out_shape=jax.ShapeDtypeStruct((B, MLp, Dp), x.dtype),
        grid=(B, MLp // tm_eff),
        in_specs=[
            pl.BlockSpec((1, 1, Tp), lambda b, m: (b, 0, 0)),
            pl.BlockSpec((1, 1, Tp), lambda b, m: (b, 0, 0)),
            pl.BlockSpec((1, Tp, Dp), lambda b, m: (b, 0, 0)),
        ],
        out_specs=pl.BlockSpec((1, tm_eff, Dp), lambda b, m: (b, m, 0)),
        compiler_params=pltpu.CompilerParams(
            dimension_semantics=("parallel", "parallel"),
            vmem_limit_bytes=vmem_limit,
        ),
    )(cum, cum_prev, x_p)

    return out_p[:, :max_len, :D], mel_len


if __name__ == "__main__":
    key = jax.random.PRNGKey(0)
    kx, kd = jax.random.split(key)

    B, T, D, MAX_LEN = 2, 8, 32, 32
    x = jax.random.normal(kx, (B, T, D), dtype=jnp.float32)
    duration = jax.random.randint(kd, (B, T), 0, 5, dtype=jnp.int32)  # sum(dur) <= 32 = MAX_LEN

    out, mel_len = length_regulator(x, duration, MAX_LEN)
    out = jax.block_until_ready(out)
    mel_len = jax.block_until_ready(mel_len)

    # reference check (mirrors the PyTorch expand/cat/pad loop)
    xn, dn = np.asarray(x), np.asarray(duration)
    ref = np.zeros((B, MAX_LEN, D), np.float32)
    ref_len = []
    for b in range(B):
        rows = [np.repeat(xn[b, i:i + 1], max(int(dn[b, i]), 0), axis=0) for i in range(T)]
        e = np.concatenate(rows, 0) if rows else np.zeros((0, D), np.float32)
        ref_len.append(e.shape[0])
        ref[b, : min(e.shape[0], MAX_LEN)] = e[:MAX_LEN]
    assert np.allclose(np.asarray(out), ref, atol=1e-5), "expanded output mismatch"
    assert np.array_equal(np.asarray(mel_len), np.array(ref_len, dtype=np.int32)), "mel_len mismatch"

    print("KERNEL_OK")
</pallas_src>

<mosaic_0001>
module attributes {stable_mosaic.version = 11 : i64} {
  func.func @_length_regulator_kernel(%arg0: i32, %arg1: i32, %arg2: memref<1x1x128xi32, #tpu.memory_space<vmem>>, %arg3: memref<1x1x128xi32, #tpu.memory_space<vmem>>, %arg4: memref<1x128x128xf32, #tpu.memory_space<vmem>>, %arg5: memref<1x32x128xf32, #tpu.memory_space<vmem>>) attributes {dimension_semantics = [#tpu.dimension_semantics<parallel>, #tpu.dimension_semantics<parallel>], iteration_bounds = array<i64: 2, 1>, scalar_prefetch = 0 : i64, scratch_operands = 0 : i64, tpu.core_type = #tpu.core_type<tc>, window_params = [{transform_indices = @transform_0, window_bounds = array<i64: 1, 1, 128>}, {transform_indices = @transform_1, window_bounds = array<i64: 1, 1, 128>}, {transform_indices = @transform_2, window_bounds = array<i64: 1, 128, 128>}, {transform_indices = @transform_3, window_bounds = array<i64: 1, 32, 128>}]} {
    %c32_i32 = arith.constant 32 : i32
    %0 = arith.muli %arg1, %c32_i32 : i32
    %1 = tpu.iota {dimensions = array<i32: 0>} : vector<32x128xi32>
    %2 = vector.broadcast %0 : i32 to vector<32x128xi32>
    %3 = arith.addi %1, %2 : vector<32x128xi32>
    %c0 = arith.constant 0 : index
    %c0_0 = arith.constant 0 : index
    %c0_1 = arith.constant 0 : index
    %4 = vector.load %arg2[%c0, %c0_0, %c0_1] : memref<1x1x128xi32, #tpu.memory_space<vmem>>, vector<1x1x128xi32>
    %5 = vector.shape_cast %4 : vector<1x1x128xi32> to vector<1x128xi32>
    %c0_2 = arith.constant 0 : index
    %c0_3 = arith.constant 0 : index
    %c0_4 = arith.constant 0 : index
    %6 = vector.load %arg3[%c0_2, %c0_3, %c0_4] : memref<1x1x128xi32, #tpu.memory_space<vmem>>, vector<1x1x128xi32>
    %7 = vector.shape_cast %6 : vector<1x1x128xi32> to vector<1x128xi32>
    %8 = vector.broadcast %7 : vector<1x128xi32> to vector<32x128xi32>
    %9 = arith.cmpi sge, %3, %8 : vector<32x128xi32>
    %10 = vector.broadcast %5 : vector<1x128xi32> to vector<32x128xi32>
    %11 = arith.cmpi slt, %3, %10 : vector<32x128xi32>
    %12 = arith.andi %9, %11 : vector<32x128xi1>
    %13 = arith.extui %12 : vector<32x128xi1> to vector<32x128xi32>
    %14 = arith.sitofp %13 : vector<32x128xi32> to vector<32x128xf32>
    %c0_5 = arith.constant 0 : index
    %c0_6 = arith.constant 0 : index
    %c0_7 = arith.constant 0 : index
    %15 = vector.load %arg4[%c0_5, %c0_6, %c0_7] : memref<1x128x128xf32, #tpu.memory_space<vmem>>, vector<1x128x128xf32>
    %16 = vector.shape_cast %15 : vector<1x128x128xf32> to vector<128x128xf32>
    %cst = arith.constant dense<0.000000e+00> : vector<32x128xf32>
    %17 = tpu.matmul %14, %16, %cst {dimension_numbers = #tpu.dot_dimension_numbers<[1], [0], [0], [1], [0, 0, 1, 1], [], []>} : vector<32x128xf32>, vector<128x128xf32>, vector<32x128xf32> -> vector<32x128xf32>
    %c0_8 = arith.constant 0 : index
    %c0_9 = arith.constant 0 : index
    %c0_10 = arith.constant 0 : index
    %18 = vector.load %arg5[%c0_8, %c0_9, %c0_10] : memref<1x32x128xf32, #tpu.memory_space<vmem>>, vector<1x32x128xf32>
    %19 = vector.shape_cast %18 : vector<1x32x128xf32> to vector<32x128xf32>
    %20 = vector.shape_cast %17 : vector<32x128xf32> to vector<1x32x128xf32>
    tpu.vector_store %arg5[%c0_8, %c0_9, %c0_10], %20 {strides = array<i32>} : memref<1x32x128xf32, #tpu.memory_space<vmem>>, vector<1x32x128xf32>,
    return
  }
  func.func @transform_0(%arg0: i32, %arg1: i32) -> (i32, i32, i32) {
    %c0_i32 = arith.constant 0 : i32
    %c0_i32_0 = arith.constant 0 : i32
    %c0_i32_1 = arith.constant 0 : i32
    return %arg0, %c0_i32, %c0_i32_0 : i32, i32, i32
  }
  func.func @transform_1(%arg0: i32, %arg1: i32) -> (i32, i32, i32) {
    %c0_i32 = arith.constant 0 : i32
    %c0_i32_0 = arith.constant 0 : i32
    %c0_i32_1 = arith.constant 0 : i32
    return %arg0, %c0_i32, %c0_i32_0 : i32, i32, i32
  }
  func.func @transform_2(%arg0: i32, %arg1: i32) -> (i32, i32, i32) {
    %c0_i32 = arith.constant 0 : i32
    %c0_i32_0 = arith.constant 0 : i32
    %c0_i32_1 = arith.constant 0 : i32
    return %arg0, %c0_i32, %c0_i32_0 : i32, i32, i32
  }
  func.func @transform_3(%arg0: i32, %arg1: i32) -> (i32, i32, i32) {
    %c0_i32 = arith.constant 0 : i32
    %c0_i32_0 = arith.constant 0 : i32
    return %arg0, %arg1, %c0_i32 : i32, i32, i32
  }
}

</mosaic_0001>

<bundles_post_ra>
// kernel: tpu_custom_call.1
= control target key start
LH: loop header
LB: loop body
LE: loop exit
PB: predicated region body
PF: predicated region fallthrough
CT: control target
= control target key end

     0   :  { %8 = vsyncpa [#allocation3], 0  ;;  %s1167_s0 = inlined_call_operand.hbm [shape: s32[2,1,128], index: 0, kind: input, shape index: {}]   ;;  %s1168_s1 = inlined_call_operand.vmem [shape: s32[2,1,128], index: 1, kind: input, shape index: {}]   ;;  %s1169_s2 = inlined_call_operand.hbm [shape: f32[2,128,128], index: 2, kind: input, shape index: {}]   ;;  %s1170_s3 = inlined_call_operand.hbm [shape: f32[2,32,128], index: 3, kind: output, shape index: {}]  }
   0x1   :  { %10 = vsyncpa [#allocation3 + $0x1], 0 }
   0x2   :  { %11 = vsyncpa [#allocation6], 0 }
   0x3   :  { %13 = vsyncpa [#allocation6 + $0x1], 0 }
   0x4   :  { %14 = vsyncpa [#allocation4], 0 }
   0x5   :  { %16 = vsyncpa [#allocation4 + $0x1], 0  ;;  %s909_s12 = smov 0   ;;  %s911_s13 = smov 0  }
   0x6   :  { %s913_s14 = smov 0   ;;  %s915_s15 = smov 0  }
   0x7   :  { %s917_s16 = smov 0   ;;  %s919_s17 = smov 0  }
   0x8 LB: > { %s527_s18 = sadd.s32 4294967295, %s879_s17   ;;  %s528_s19 = sadd.s32 4294967294, %s879_s17   ;;  %s879_s17 = sphi %s919_s17, %s22_s17   ;;  %s875_s16 = sphi %s917_s16, %s1189_s16   ;;  %s871_s15 = sphi %s915_s15, %s1188_s15   ;;  %s867_s14 = sphi %s913_s14, %s1187_s14   ;;  %s863_s13 = sphi %s911_s13, %s1186_s13   ;;  %s859_s12 = sphi %s909_s12, %s1185_s12  }
   0x9   : > { %s34_s20 = sadd.s32 1, %s875_s16  ;;  %s41_s21 = sadd.s32 1, %s867_s14 }
   0xa   : > { %p36_p0 = scmp.ge.s32.totalorder %s34_s20, 2  ;;  %p48_p1 = scmp.ne.s32.totalorder %s867_s14, %s863_s13 }
   0xb   : > { %p49_p2 = scmp.eq.s32.totalorder %s879_s17, 0  ;;  %p54_p3 = scmp.ne.s32.totalorder %s863_s13, %s859_s12 }
   0xc   : > { %s1191_s20 = smov (%p36_p0, %s34_s20), 0  ;;  %p55_p5 = scmp.eq.s32.totalorder %s527_s18, 0 }
   0xd   : > { %p950_p4 = por %p49_p2, %p48_p1  ;;  %s38_s23 = ssub.s32 %s875_s16, %s1191_s20 }
   0xe   : > { %p132_p6 = scmp.eq.s32.totalorder %s527_s18, 1  ;;  %p39_p7 = scmp.eq.s32.totalorder %s38_s23, 0 }
   0xf   : > { %p956_p8 = por %p55_p5, %p54_p3  ;;  %p138_p10 = scmp.eq.s32.totalorder %s528_s19, 1 }
  0x10   : > { %p960_p9 = por %p132_p6, %p48_p1  ;;  %p678_p13 = scmp.lt.s32.totalorder %s879_s17, 2 }
  0x11   : > { %s1174_s24 = scalar_select %p956_p8, 1, 0 }
  0x12   : > { %s1175_s25 = scalar_select %p960_p9, 1, 0 }
  0x13   : > { %s965_s26 = scalar_select %p39_p7, %s867_s14, %s41_s21  }
  0x14   : > { %p967_p11 = por %p138_p10, %p54_p3  ;;  %s974_s28 = sand.u32 1, %s867_s14  }
  0x15   : > { %s531_s29 = sshll.u32 %s875_s16, 4  ;;  %s161_s30 = scalar_lea.vmem [#allocation2], %s974_s28 }
  0x16   : > { %s1176_s27 = scalar_select %p967_p11, 1, 0 }
  0x17   : > { %s168_s4 = sshll.u32 %s161_s30, 4  ;;  %s981_s7 = scalar_lea.hbm %s1167_s0, %s531_s29  ;;  %s983_s4 = int_to_ptr.vmem [resolvable:$true] %s168_s4 }
  0x18   : > { %p987_p0 = pnand %p678_p13, %p950_p4  ;;  %s532_s9 = sshll.u32 %s974_s28, 7 }
  0x19   : > { %s159_s10 = scalar_lea.sflag [#allocation3], %s974_s28  ;;  %s733_s11 = scalar_lea.hbm %s981_s7, 16 }
  0x1a   : > { %p734_p3 = scmp.ne.s32.totalorder %s981_s7, %s733_s11  ;;  %p735_p5 = pneg %p987_p0 }
  0x1b   : > { %s738_s21 = scalar_lea.hbm %s1167_s0, 32  ;;  %p739_p4 = scmp.lt.u32.totalorder %s981_s7, %s1167_s0 }
  0x1c   : > { %p736_p6 = pnand %p735_p5, %p734_p3  ;;  %p740_p10 = scmp.lt.u32.totalorder %s738_s21, %s733_s11 }
  0x1d   : > { %p742_p12 = scmp.lt.u32.totalorder %s733_s11, %s981_s7 }
  0x1e   : > { %p737_p7 = pneg %p736_p6  ;;  %p741_p13 = por %p740_p10, %p739_p4 }
  0x20   : > { %p743_p1 = por %p742_p12, %p741_p13 }
  0x22   : > { %p744_p2 = pnand %p743_p1, %p737_p7 }
  0x24   : > { %747 = shalt.err (!%p744_p2)
}
  0x25   : > { %s748_s29 = scalar_lea.vmem %s983_s4, 16  ;;  %s881_s30 = smov [#allocation2]  }
  0x26   : > { %p749_p3 = scmp.ne.s32.totalorder %s983_s4, %s748_s29  ;;  %s753_s5 = sshll.u32 %s881_s30, 4  ;;  %s754_s5 = int_to_ptr.vmem [resolvable:$false] %s753_s5 }
  0x27   : > { %s755_s6 = scalar_lea.vmem %s754_s5, 32  ;;  %p756_p9 = scmp.lt.s32.totalorder %s983_s4, %s754_s5 }
  0x28   : > { %p751_p6 = pnand %p749_p3, %p735_p5  ;;  %p757_p4 = scmp.lt.s32.totalorder %s755_s6, %s748_s29 }
  0x2a   : > { %p752_p11 = pneg %p751_p6  ;;  %p758_p10 = por %p757_p4, %p756_p9 }
  0x2c   : > { %p759_p12 = pnand %p758_p10, %p752_p11 }
  0x2e   : > { %762 = shalt.err (!%p759_p12)
}
  0x2f   : > { %670 = dma.hbm_to_vmem [thread:$0]  (!%p987_p0), %s981_s7, 16, %s983_s4, %s159_s10  }
  0x30   : > { %p1178_p1 = scmp.lt.s32.totalorder %s879_s17, 3  ;;  %p1179_p2 = scmp.ge.s32.totalorder %s879_s17, 1 }
  0x31   : > { %s553_s18 = sshll.u32 %s875_s16, 11  ;;  %s185_s19 = scalar_lea.vmem [#allocation5], %s532_s9 }
  0x32   : > { %p1024_p7 = pnand %p1179_p2, %p1178_p1  ;;  %s192_s21 = sshll.u32 %s185_s19, 4  ;;  %s1036_s21 = int_to_ptr.vmem [resolvable:$true] %s192_s21 }
  0x33   : > { %s1034_s29 = scalar_lea.hbm %s1169_s2, %s553_s18  ;;  %s182_s4 = scalar_lea.sflag [#allocation6], %s974_s28 }
  0x34   : > { %s763_s7 = scalar_lea.hbm %s1034_s29, 2048  ;;  %s768_s30 = scalar_lea.hbm %s1169_s2, 4096 }
  0x35   : > { %p764_p9 = scmp.ne.s32.totalorder %s1034_s29, %s763_s7  ;;  %p769_p3 = scmp.lt.u32.totalorder %s1034_s29, %s1169_s2 }
  0x36   : > { %p770_p6 = scmp.lt.u32.totalorder %s768_s30, %s763_s7  ;;  %p772_p10 = scmp.lt.u32.totalorder %s763_s7, %s1034_s29 }
  0x37   : > { %p766_p11 = pnand %p764_p9, %p735_p5 }
  0x38   : > { %p771_p4 = por %p770_p6, %p769_p3 }
  0x39   : > { %p767_p13 = pneg %p766_p11 }
  0x3a   : > { %p773_p12 = por %p772_p10, %p771_p4 }
  0x3c   : > { %p774_p1 = pnand %p773_p12, %p767_p13 }
  0x3e   : > { %777 = shalt.err (!%p774_p1)
}
  0x3f   : > { %s778_s18 = scalar_lea.vmem %s1036_s21, 2048  ;;  %s882_s19 = smov [#allocation5]  }
  0x40   : > { %p779_p2 = scmp.ne.s32.totalorder %s1036_s21, %s778_s18  ;;  %s783_s22 = sshll.u32 %s882_s19, 4  ;;  %s784_s22 = int_to_ptr.vmem [resolvable:$false] %s783_s22 }
  0x41   : > { %s785_s23 = scalar_lea.vmem %s784_s22, 4096  ;;  %p786_p8 = scmp.lt.s32.totalorder %s1036_s21, %s784_s22 }
  0x42   : > { %p781_p9 = pnand %p779_p2, %p735_p5  ;;  %p787_p3 = scmp.lt.s32.totalorder %s785_s23, %s778_s18 }
  0x44   : > { %p782_p11 = pneg %p781_p9  ;;  %p788_p6 = por %p787_p3, %p786_p8 }
  0x46   : > { %p789_p4 = pnand %p788_p6, %p782_p11 }
  0x48   : > { %792 = shalt.err (!%p789_p4)
}
  0x49   : > { %s883_s7 = smov 128   ;;  %s884_s9 = smov 8  }
  0x4a   : > { %673 = dma.hbm_to_vmem [thread:$0]  (!%p987_p0), %s1034_s29, 2048, %s1036_s21, %s182_s4, %s883_s7, %s883_s7, %s884_s9  }
  0x4b   : > { %204 = sbr.rel (%p1024_p7) target bundleno = 349 (0x15d), region = 32  ;;  %s1067_s10 = sand.u32 (!%p1024_p7), 1, %s863_s13  }
  0x4c   : > { %s207_s30 = scalar_lea.sflag (!%p1024_p7), [#allocation3], %s1067_s10  ;;  %s209_s5 = scalar_lea.vmem (!%p1024_p7), [#allocation2], %s1067_s10 }
  0x4d   : > { %p1181_p8 = scmp.ne.s32.totalorder (!%p1024_p7), %s1174_s24, 0 }
  0x52   : > { %846 = dma.done.wait (%p1181_p8), %s207_s30, 16  }
  0x53   : > { %848 = vsyncadd (%p1181_p8), %s207_s30, 4294967280  ;;  %s536_s28 = sshll.u32 %s1067_s10, 7  ;;  %s215_s8 = scalar_lea.sflag [#allocation6], %s1067_s10 }
  0x54   : > { %s1077_s11 = scalar_lea.vmem [#allocation5], %s536_s28 }
  0x55   : > { %850 = dma.done.wait (%p1181_p8), %s215_s8, 2048  }
  0x56   : > { %852 = vsyncadd (%p1181_p8), %s215_s8, 4294965248  ;;  %p248_p0 = scmp.lt.s32.totalorder %s871_s15, 1  ;;  %v253_v0 = vlaneseq  ;;  %v293_v2 = vld [vmem:[%s1077_s11] sm:$0xff]  ;;  %v294_v3 = vld [vmem:[%s1077_s11 + $0x8] sm:$0xff]  ;;  %v885_v19 = vmov 1.0   ;;  %s537_s6 = sshll.u32 %s1067_s10, 5 }
  0x57   : > { %v295_v4 = vld [vmem:[%s1077_s11 + $0x10] sm:$0xff]  ;;  %v613_v5 = vpack.c.bf16 %v294_v3, %v293_v2  ;;  %v296_v6 = vld [vmem:[%s1077_s11 + $0x18] sm:$0xff]  ;;  %v297_v8 = vld [vmem:[%s1077_s11 + $0x20] sm:$0xff]  ;;  %s247_s18 = scalar_lea.vmem [#allocation7], %s537_s6  ;;  %s554_s22 = sshll.u32 %s871_s15, 9 }
  0x58   : > { %s249_s21 = scalar_select %p248_p0, %s871_s15, 1  ;;  %v1085_v1 = vshrl.u32 %v253_v0, 7  ;;  %v617_v7 = vpack.c.bf16 %v296_v6, %v295_v4  ;;  %v298_v9 = vld [vmem:[%s1077_s11 + $0x28] sm:$0xff]  ;;  %v539_v12 = vld [vmem:[%s209_s5] ss:$0 sm:$0xff]  ;;  %v299_v14 = vld [vmem:[%s1077_s11 + $0x30] sm:$0xff] }
  0x59   : > { %614 = vmatprep.subr.bf16.mxu0 %v613_v5  ;;  %645 = vmatprep.subr.bf16.mxu1 %v613_v5  ;;  %v621_v11 = vpack.c.bf16 %v298_v9, %v297_v8  ;;  %v300_v15 = vld [vmem:[%s1077_s11 + $0x38] sm:$0xff]  ;;  %v301_v17 = vld [vmem:[%s1077_s11 + $0x40] sm:$0xff]  ;;  %v302_v18 = vld [vmem:[%s1077_s11 + $0x48] sm:$0xff]  ;;  %s414_s19 = sshll.u32 %s247_s18, 4  ;;  %s1118_s9 = scalar_lea.hbm %s1170_s3, %s554_s22  ;;  %s1113_s19 = int_to_ptr.vmem [resolvable:$true] %s414_s19 }
  0x5a   : > { %s250_s4 = scalar_lea.vmem %s1168_s1, %s249_s21  ;;  %v256_v10 = vadd.s32 16, %v1085_v1  ;;  %616 = vmatpush3.bf16.msra.mxu0 %v613_v5  ;;  %653 = vmatpush3.bf16.msra.mxu1 %v613_v5  ;;  %vm277_vm1 = vcmp.lt.s32.totalorder %v1085_v1, %v539_v12  ;;  %v625_v16 = vpack.c.bf16 %v300_v15, %v299_v14  ;;  %v629_v20 = vpack.c.bf16 %v302_v18, %v301_v17  ;;  %v303_v21 = vld [vmem:[%s1077_s11 + $0x50] sm:$0xff]  ;;  %v304_v22 = vld [vmem:[%s1077_s11 + $0x58] sm:$0xff]  ;;  %v305_v24 = vld [vmem:[%s1077_s11 + $0x60] sm:$0xff]  ;;  %s399_s30 = scalar_lea.sflag [#allocation4], %s1067_s10 }
  0x5b   : > { %618 = vmatprep.subr.bf16.mxu0 %v617_v7  ;;  %646 = vmatprep.subr.bf16.mxu1 %v617_v7  ;;  %v538_v13 = vld [vmem:[%s250_s4] ss:$0 sm:$0xff]  ;;  %v633_v23 = vpack.c.bf16 %v304_v22, %v303_v21  ;;  %v306_v25 = vld [vmem:[%s1077_s11 + $0x68] sm:$0xff]  ;;  %v307_v27 = vld [vmem:[%s1077_s11 + $0x70] sm:$0xff]  ;;  %v255_v29 = vadd.s32 8, %v1085_v1  ;;  %v257_v31 = vadd.s32 24, %v1085_v1 }
  0x5c   : > { %vm269_vm0 = vcmp.ge.s32.totalorder %v1085_v1, %v538_v13  ;;  %vm271_vm2 = vcmp.ge.s32.totalorder %v256_v10, %v538_v13  ;;  %vm279_vm4 = vcmp.lt.s32.totalorder %v256_v10, %v539_v12  ;;  %v637_v26 = vpack.c.bf16 %v306_v25, %v305_v24  ;;  %v308_v28 = vld [vmem:[%s1077_s11 + $0x78] sm:$0xff]  ;;  %s793_s15 = scalar_lea.vmem %s1113_s19, 512  ;;  %p1182_p7 = scmp.ne.s32.totalorder %s1175_s25, 0 }
  0x5d   : > { %vm281_vm3 = vmand %vm269_vm0, %vm277_vm1  ;;  %v641_v30 = vpack.c.bf16 %v308_v28, %v307_v27  ;;  %vm270_vm6 = vcmp.ge.s32.totalorder %v255_v29, %v538_v13  ;;  %vm278_vm7 = vcmp.lt.s32.totalorder %v255_v29, %v539_v12  ;;  %vm272_vm8 = vcmp.ge.s32.totalorder %v257_v31, %v538_v13  ;;  %p794_p5 = scmp.ne.s32.totalorder %s1113_s19, %s793_s15  ;;  %s886_s5 = smov [#allocation7]  }
  0x5e   : > { %620 = vmatpush3.bf16.msra.mxu0 %v617_v7  ;;  %654 = vmatpush3.bf16.msra.mxu1 %v617_v7  ;;  %vm283_vm5 = vmand %vm271_vm2, %vm279_vm4  ;;  %vm280_vm9 = vcmp.lt.s32.totalorder %v257_v31, %v539_v12  ;;  %s797_s28 = sshll.u32 %s886_s5, 4  ;;  %s798_s28 = int_to_ptr.vmem [resolvable:$false] %s797_s28 }
  0x5f   : > { %622 = vmatprep.subr.bf16.mxu0 %v621_v11  ;;  %647 = vmatprep.subr.bf16.mxu1 %v621_v11  ;;  %vm282_vm10 = vmand %vm270_vm6, %vm278_vm7  ;;  %p795_p13 = pnand %p794_p5, %p1182_p7  ;;  %s799_s8 = scalar_lea.vmem %s798_s28, 1024 }
  0x60   : > { %607 = vmatprep.mubr.msk.f32.mxu0 %vm281_vm3, %v885_v19  ;;  %610 = vmatprep.mubr.msk.f32.mxu1 %vm283_vm5, %v885_v19  ;;  %vm284_vm11 = vmand %vm272_vm8, %vm280_vm9  ;;  %p800_p12 = scmp.lt.s32.totalorder %s1113_s19, %s798_s28  ;;  %p801_p1 = scmp.lt.s32.totalorder %s799_s8, %s793_s15 }
  0x61   : > { %p796_p10 = pneg %p795_p13 }
  0x62   : > { %624 = vmatpush3.bf16.msra.mxu0 %v621_v11  ;;  %655 = vmatpush3.bf16.msra.mxu1 %v621_v11  ;;  %p802_p2 = por %p801_p1, %p800_p12 }
  0x63   : > { %626 = vmatprep.subr.bf16.mxu0 %v625_v16  ;;  %648 = vmatprep.subr.bf16.mxu1 %v625_v16 }
  0x64   : > { %p803_p9 = pnand %p802_p2, %p796_p10 }
  0x66   : > { %628 = vmatpush3.bf16.msra.mxu0 %v625_v16  ;;  %656 = vmatpush3.bf16.msra.mxu1 %v625_v16 }
  0x67   : > { %630 = vmatprep.subr.bf16.mxu0 %v629_v20  ;;  %649 = vmatprep.subr.bf16.mxu1 %v629_v20 }
  0x6a   : > { %632 = vmatpush3.bf16.msra.mxu0 %v629_v20  ;;  %657 = vmatpush3.bf16.msra.mxu1 %v629_v20 }
  0x6b   : > { %634 = vmatprep.subr.bf16.mxu0 %v633_v23  ;;  %650 = vmatprep.subr.bf16.mxu1 %v633_v23 }
  0x6e   : > { %636 = vmatpush3.bf16.msra.mxu0 %v633_v23  ;;  %658 = vmatpush3.bf16.msra.mxu1 %v633_v23 }
  0x6f   : > { %638 = vmatprep.subr.bf16.mxu0 %v637_v26  ;;  %651 = vmatprep.subr.bf16.mxu1 %v637_v26 }
  0x72   : > { %640 = vmatpush3.bf16.msra.mxu0 %v637_v26  ;;  %659 = vmatpush3.bf16.msra.mxu1 %v637_v26 }
  0x73   : > { %642 = vmatprep.subr.bf16.mxu0 %v641_v30  ;;  %652 = vmatprep.subr.bf16.mxu1 %v641_v30 }
  0x76   : > { %644 = vmatpush3.bf16.msra.mxu0 %v641_v30  ;;  %660 = vmatpush3.bf16.msra.mxu1 %v641_v30 }
  0x79   : > { %608 = vmatmul.mubr.msk.f32.vlgmr.msra.gmra.mrb[0].mxu0 %vm282_vm10, %v885_v19  ;;  %611 = vmatmul.mubr.msk.f32.vlgmr.msra.gmra.mrb[0].mxu1 %vm284_vm11, %v885_v19 }
 0x14c   : > { %v609_v32 = vpop.f32.mrb[0].mxu0  ;;  %v612_v33 = vpop.f32.mrb[0].mxu1 }
 0x14d   : > { %395 = vst [vmem:[%s247_s18 + $0x8] sm:$0xff] %v609_v32  ;;  %397 = vst [vmem:[%s247_s18 + $0x18] sm:$0xff] %v612_v33  ;;  %v375_v34 = vpop.f32.mrb[1].mxu0  ;;  %v385_v35 = vpop.f32.mrb[1].mxu1 }
 0x14e   : > { %394 = vst [vmem:[%s247_s18] sm:$0xff] %v375_v34  ;;  %396 = vst [vmem:[%s247_s18 + $0x10] sm:$0xff] %v385_v35 }
 0x14f   : > { %806 = shalt.err (!%p803_p9)
}
 0x150   : > { %s807_s11 = scalar_lea.hbm %s1118_s9, 512  ;;  %s811_s29 = scalar_lea.hbm %s1170_s3, 1024 }
 0x151   : > { %p808_p11 = scmp.ne.s32.totalorder %s1118_s9, %s807_s11  ;;  %p812_p4 = scmp.lt.u32.totalorder %s1118_s9, %s1170_s3 }
 0x152   : > { %p813_p8 = scmp.lt.u32.totalorder %s811_s29, %s807_s11  ;;  %p815_p5 = scmp.lt.u32.totalorder %s807_s11, %s1118_s9 }
 0x153   : > { %p809_p3 = pnand %p808_p11, %p1182_p7 }
 0x154   : > { %p814_p0 = por %p813_p8, %p812_p4 }
 0x155   : > { %p810_p6 = pneg %p809_p3 }
 0x156   : > { %p816_p13 = por %p815_p5, %p814_p0 }
 0x158   : > { %p817_p10 = pnand %p816_p13, %p810_p6 }
 0x15a   : > { %820 = shalt.err (!%p817_p10)
}
 0x15b   : > { %s887_s18 = smov 128   ;;  %s888_s22 = smov 8  }
 0x15c   : > { %665 = dma.vmem_to_hbm [thread:$0]  (%p1182_p7), %s1113_s19, 512, %s1118_s9, %s399_s30, %s887_s18, %s887_s18, %s888_s22  }
 0x15d PF: > { %s429_s23 = sand.u32 1, %s859_s12   ;;  %p1183_p12 = scmp.ne.s32.totalorder %s1176_s27, 0 }
 0x15e   : > { %p1184_p1 = scmp.ge.s32.totalorder %s879_s17, 2  ;;  %s430_s7 = scalar_lea.sflag [#allocation4], %s429_s23 }
 0x160   : > { %p675_p2 = pnand %p1184_p1, %p1183_p12 }
 0x162   : > { %854 = dma.done.wait (!%p675_p2), %s430_s7, 512  }
 0x163   : > { %856 = vsyncadd (!%p675_p2), %s430_s7, 4294966784  ;;  %s22_s17 = sadd.s32 1, %s879_s17   ;;  %s1185_s12 = smov %s863_s13 }
 0x164   : > { %p19_p9 = scmp.ge.s32.totalorder %s22_s17, 4   ;;  %s1186_s13 = smov %s867_s14 }
 0x165   : > { %s1187_s14 = smov %s965_s26  ;;  %s1188_s15 = smov %s875_s16 }
 0x166   : > { %s1189_s16 = smov %s1191_s20  ;;  %21 = sbr.rel (!%p19_p9) target bundleno = 8 (0x8), region = 93 }
 0x16d   :  { %435 = vsyncpa [#allocation3], 1 }
 0x16e   :  { %437 = vsyncpa [#allocation3 + $0x1], 1 }
 0x16f   :  { %438 = vsyncpa [#allocation6], 1 }
 0x170   :  { %440 = vsyncpa [#allocation6 + $0x1], 1 }
 0x171   :  { %441 = vsyncpa [#allocation4], 1 }
 0x172   :  { %443 = vsyncpa [#allocation4 + $0x1], 1 }

</bundles_post_ra>
